<compile_context>
chip_gen: v5e
topology: v5e:2x2
jax: 0.10.0
libtpu: 0.0.40
codegen_flags: <defaults>
</compile_context>

<pallas_src>
import math

import jax
import jax.numpy as jnp
from jax.experimental import pallas as pl
from jax.experimental.pallas import tpu as pltpu

_LANE = 128


def _round_up(n, m):
    return -(-n // m) * m


def _make_kernel(precision):
    def _mlp_kernel(x_ref, w1_ref, b1_ref, w2_ref, b2_ref,
                    w3_ref, b3_ref, w4_ref, b4_ref, o_ref):
        x = x_ref[...]                                              # (8,  TB)
        # Layer 1: (64, 8) @ (8, TB) -> (64, TB)
        h = jnp.dot(w1_ref[...], x, precision=precision,
                    preferred_element_type=jnp.float32)
        h = jnp.maximum(h + b1_ref[...], 0.0)
        # Layer 2: (64, 64) @ (64, TB) -> (64, TB)
        h = jnp.dot(w2_ref[...], h.astype(w2_ref.dtype), precision=precision,
                    preferred_element_type=jnp.float32)
        h = jnp.maximum(h + b2_ref[...], 0.0)
        # Layer 3: (16, 64) @ (64, TB) -> (16, TB)
        h = jnp.dot(w3_ref[...], h.astype(w3_ref.dtype), precision=precision,
                    preferred_element_type=jnp.float32)
        h = jnp.maximum(h + b3_ref[...], 0.0)
        # Layer 4 (16 -> 1, no activation): VPU multiply + sublane reduce
        # instead of an M=1 MXU matmul.  b4 is a scalar read from SMEM.
        y = jnp.sum(h * w4_ref[...], axis=0, keepdims=True) + b4_ref[0, 0]
        o_ref[...] = y.astype(o_ref.dtype)                          # (1, TB)
    return _mlp_kernel


def mlp_forward(image, params, *, tb=8192, use_bf16=False):
    """image: shape (B, ...) whose trailing dims flatten to 8 features."""
    B = image.shape[0]
    x = image.reshape(B, -1).astype(jnp.float32)                    # (B, 8)
    assert x.shape[1] == 8, f"expected 8 input features, got {x.shape[1]}"
    w1, b1, w2, b2, w3, b3, w4, b4 = params

    # Batch tile: lane-dense (multiple of 128), large enough to amortize the
    # per-grid-step overhead, capped at 16384 for VMEM safety on v5e/v7x, and
    # split so that there are >= 2 grid steps whenever B > 128 (v7x megacore).
    tb_cap = min(tb, 16384)
    half = _round_up(-(-B // 2), _LANE)
    tb_eff = max(_LANE, min(tb_cap, half))
    num_blocks = pl.cdiv(B, tb_eff)

    # Single logical transpose; allow_input_fusion lets XLA fuse it into the
    # Pallas operand so no extra HBM pass over x is materialized.
    xt = x.T                                                        # (8, B)
    if use_bf16:
        xt = xt.astype(jnp.bfloat16)
        w1, w2, w3 = (w.astype(jnp.bfloat16) for w in (w1, w2, w3))
        precision = jax.lax.Precision.DEFAULT
    else:
        precision = jax.lax.Precision.HIGHEST

    const = lambda i: (0, 0)   # weights/biases: fetched once, VMEM-resident
    out = pl.pallas_call(
        _make_kernel(precision),
        out_shape=jax.ShapeDtypeStruct((1, B), jnp.float32),
        grid=(num_blocks,),
        in_specs=[
            pl.BlockSpec((8, tb_eff), lambda i: (0, i)),            # x tile
            pl.BlockSpec(w1.shape, const), pl.BlockSpec(b1.shape, const),
            pl.BlockSpec(w2.shape, const), pl.BlockSpec(b2.shape, const),
            pl.BlockSpec(w3.shape, const), pl.BlockSpec(b3.shape, const),
            pl.BlockSpec(w4.shape, const),
            pl.BlockSpec(memory_space=pltpu.MemorySpace.SMEM),      # b4 (1,1)
        ],
        out_specs=pl.BlockSpec((1, tb_eff), lambda i: (0, i)),
        compiler_params=pltpu.CompilerParams(
            dimension_semantics=("parallel",),        # v7x megacore sharding
            vmem_limit_bytes=32 * 1024 * 1024,        # explicit, all gens
            allow_input_fusion=[True] + [False] * 8,  # fuse x transpose in
        ),
    )(xt, w1, b1, w2, b2, w3, b3, w4, b4)

    # (1, B) row-major == (B, 1); ragged-edge lanes were discarded by Pallas.
    return out.reshape(B, 1)


def init_params(key):
    """Deterministic init mimicking nn.Linear default U[-1/sqrt(fan_in), +].

    Weights are kept in PyTorch orientation (out_features, in_features);
    biases as (out_features, 1).  w4 is stored as (16, 1) (its transpose) for
    the in-kernel VPU mul + sublane-reduce path.
    """
    dims = [(8, 64), (64, 64), (64, 16), (16, 1)]
    params = []
    for i, (fan_in, fan_out) in enumerate(dims):
        kw, kb = jax.random.split(jax.random.fold_in(key, i))
        bound = 1.0 / math.sqrt(fan_in)
        w = jax.random.uniform(kw, (fan_out, fan_in), jnp.float32, -bound, bound)
        b = jax.random.uniform(kb, (fan_out, 1), jnp.float32, -bound, bound)
        if (fan_in, fan_out) == (16, 1):
            w = w.T                      # (16, 1) for the VPU mul+reduce path
        params += [w, b]
    return tuple(params)


def _reference_forward(image, params):
    x = image.reshape(image.shape[0], -1).astype(jnp.float32)
    w1, b1, w2, b2, w3, b3, w4, b4 = params
    hp = jax.lax.Precision.HIGHEST
    h = jax.nn.relu(jnp.dot(x, w1.T, precision=hp) + b1.T)
    h = jax.nn.relu(jnp.dot(h, w2.T, precision=hp) + b2.T)
    h = jax.nn.relu(jnp.dot(h, w3.T, precision=hp) + b3.T)
    return jnp.dot(h, w4, precision=hp) + b4.T


if __name__ == "__main__":
    key = jax.random.PRNGKey(0)
    k_param, k_x1, k_x2 = jax.random.split(key, 3)

    params = init_params(k_param)

    # Small "image" batch whose flattened feature size is 8 (e.g. 2x2x2).
    # Exercises the single-block path with a ragged (B < 128) edge.
    image_small = jax.random.normal(k_x1, (4, 2, 2, 2), dtype=jnp.float32)
    out_small = jax.block_until_ready(mlp_forward(image_small, params))
    ref_small = _reference_forward(image_small, params)
    assert out_small.shape == (4, 1)
    assert jnp.allclose(out_small, ref_small, atol=1e-4, rtol=1e-4)

    # Non-multiple batch exercising the >=2-block grid + clipped last block.
    image_grid = jax.random.normal(k_x2, (300, 8), dtype=jnp.float32)
    out_grid = jax.block_until_ready(mlp_forward(image_grid, params))
    ref_grid = _reference_forward(image_grid, params)
    assert out_grid.shape == (300, 1)
    assert jnp.allclose(out_grid, ref_grid, atol=1e-4, rtol=1e-4)

    print("KERNEL_OK")
</pallas_src>

<mosaic_0001>
module attributes {stable_mosaic.version = 11 : i64} {
  func.func @_mlp_kernel(%arg0: i32, %arg1: memref<8x128xf32, #tpu.memory_space<vmem>>, %arg2: memref<64x8xf32, #tpu.memory_space<vmem>>, %arg3: memref<64x1xf32, #tpu.memory_space<vmem>>, %arg4: memref<64x64xf32, #tpu.memory_space<vmem>>, %arg5: memref<64x1xf32, #tpu.memory_space<vmem>>, %arg6: memref<16x64xf32, #tpu.memory_space<vmem>>, %arg7: memref<16x1xf32, #tpu.memory_space<vmem>>, %arg8: memref<16x1xf32, #tpu.memory_space<vmem>>, %arg9: memref<1x1xf32, #tpu.memory_space<smem>>, %arg10: memref<1x128xf32, #tpu.memory_space<vmem>>) attributes {dimension_semantics = [#tpu.dimension_semantics<parallel>], iteration_bounds = array<i64: 1>, scalar_prefetch = 0 : i64, scratch_operands = 0 : i64, tpu.core_type = #tpu.core_type<tc>, window_params = [{transform_indices = @transform_0, window_bounds = array<i64: 8, 128>}, {pipeline_mode = #tpu.pipeline_mode<synchronous>, transform_indices = @transform_1, window_bounds = array<i64: 64, 8>}, {pipeline_mode = #tpu.pipeline_mode<synchronous>, transform_indices = @transform_2, window_bounds = array<i64: 64, 1>}, {pipeline_mode = #tpu.pipeline_mode<synchronous>, transform_indices = @transform_3, window_bounds = array<i64: 64, 64>}, {pipeline_mode = #tpu.pipeline_mode<synchronous>, transform_indices = @transform_4, window_bounds = array<i64: 64, 1>}, {pipeline_mode = #tpu.pipeline_mode<synchronous>, transform_indices = @transform_5, window_bounds = array<i64: 16, 64>}, {pipeline_mode = #tpu.pipeline_mode<synchronous>, transform_indices = @transform_6, window_bounds = array<i64: 16, 1>}, {pipeline_mode = #tpu.pipeline_mode<synchronous>, transform_indices = @transform_7, window_bounds = array<i64: 16, 1>}, {transform_indices = @transform_8, window_bounds = array<i64: 1, 1>}, {transform_indices = @transform_9, window_bounds = array<i64: 1, 128>}]} {
    %c0 = arith.constant 0 : index
    %c0_0 = arith.constant 0 : index
    %0 = vector.load %arg1[%c0, %c0_0] : memref<8x128xf32, #tpu.memory_space<vmem>>, vector<8x128xf32>
    %c0_1 = arith.constant 0 : index
    %c0_2 = arith.constant 0 : index
    %1 = vector.load %arg2[%c0_1, %c0_2] : memref<64x8xf32, #tpu.memory_space<vmem>>, vector<64x8xf32>
    %cst = arith.constant dense<0.000000e+00> : vector<64x128xf32>
    %2 = tpu.matmul %1, %0, %cst {dimension_numbers = #tpu.dot_dimension_numbers<[1], [0], [0], [1], [0, 0, 1, 1], [], []>, precision = #tpu.contract_precision<fp32>} : vector<64x8xf32>, vector<8x128xf32>, vector<64x128xf32> -> vector<64x128xf32>
    %c0_3 = arith.constant 0 : index
    %c0_4 = arith.constant 0 : index
    %3 = vector.load %arg3[%c0_3, %c0_4] : memref<64x1xf32, #tpu.memory_space<vmem>>, vector<64x1xf32>
    %4 = vector.broadcast %3 : vector<64x1xf32> to vector<64x128xf32>
    %5 = arith.addf %2, %4 : vector<64x128xf32>
    %cst_5 = arith.constant 0.000000e+00 : f32
    %6 = vector.broadcast %cst_5 : f32 to vector<64x128xf32>
    %7 = arith.maximumf %5, %6 : vector<64x128xf32>
    %c0_6 = arith.constant 0 : index
    %c0_7 = arith.constant 0 : index
    %8 = vector.load %arg4[%c0_6, %c0_7] : memref<64x64xf32, #tpu.memory_space<vmem>>, vector<64x64xf32>
    %cst_8 = arith.constant dense<0.000000e+00> : vector<64x128xf32>
    %9 = tpu.matmul %8, %7, %cst_8 {dimension_numbers = #tpu.dot_dimension_numbers<[1], [0], [0], [1], [0, 0, 1, 1], [], []>, precision = #tpu.contract_precision<fp32>} : vector<64x64xf32>, vector<64x128xf32>, vector<64x128xf32> -> vector<64x128xf32>
    %c0_9 = arith.constant 0 : index
    %c0_10 = arith.constant 0 : index
    %10 = vector.load %arg5[%c0_9, %c0_10] : memref<64x1xf32, #tpu.memory_space<vmem>>, vector<64x1xf32>
    %11 = vector.broadcast %10 : vector<64x1xf32> to vector<64x128xf32>
    %12 = arith.addf %9, %11 : vector<64x128xf32>
    %cst_11 = arith.constant 0.000000e+00 : f32
    %13 = vector.broadcast %cst_11 : f32 to vector<64x128xf32>
    %14 = arith.maximumf %12, %13 : vector<64x128xf32>
    %c0_12 = arith.constant 0 : index
    %c0_13 = arith.constant 0 : index
    %15 = vector.load %arg6[%c0_12, %c0_13] : memref<16x64xf32, #tpu.memory_space<vmem>>, vector<16x64xf32>
    %cst_14 = arith.constant dense<0.000000e+00> : vector<16x128xf32>
    %16 = tpu.matmul %15, %14, %cst_14 {dimension_numbers = #tpu.dot_dimension_numbers<[1], [0], [0], [1], [0, 0, 1, 1], [], []>, precision = #tpu.contract_precision<fp32>} : vector<16x64xf32>, vector<64x128xf32>, vector<16x128xf32> -> vector<16x128xf32>
    %c0_15 = arith.constant 0 : index
    %c0_16 = arith.constant 0 : index
    %17 = vector.load %arg7[%c0_15, %c0_16] : memref<16x1xf32, #tpu.memory_space<vmem>>, vector<16x1xf32>
    %18 = vector.broadcast %17 : vector<16x1xf32> to vector<16x128xf32>
    %19 = arith.addf %16, %18 : vector<16x128xf32>
    %cst_17 = arith.constant 0.000000e+00 : f32
    %20 = vector.broadcast %cst_17 : f32 to vector<16x128xf32>
    %21 = arith.maximumf %19, %20 : vector<16x128xf32>
    %c0_18 = arith.constant 0 : index
    %c0_19 = arith.constant 0 : index
    %22 = vector.load %arg8[%c0_18, %c0_19] : memref<16x1xf32, #tpu.memory_space<vmem>>, vector<16x1xf32>
    %23 = vector.broadcast %22 : vector<16x1xf32> to vector<16x128xf32>
    %24 = arith.mulf %21, %23 : vector<16x128xf32>
    %cst_20 = arith.constant dense<0.000000e+00> : vector<128xf32>
    %25 = vector.multi_reduction <add>, %24, %cst_20 [0] : vector<16x128xf32> to vector<128xf32>
    %26 = vector.shape_cast %25 : vector<128xf32> to vector<1x128xf32>
    %c0_21 = arith.constant 0 : index
    %c0_22 = arith.constant 0 : index
    %27 = memref.load %arg9[%c0_21, %c0_22] : memref<1x1xf32, #tpu.memory_space<smem>>
    %28 = vector.broadcast %27 : f32 to vector<1x128xf32>
    %29 = arith.addf %26, %28 : vector<1x128xf32>
    %c0_23 = arith.constant 0 : index
    %c0_24 = arith.constant 0 : index
    %30 = vector.load %arg10[%c0_23, %c0_24] : memref<1x128xf32, #tpu.memory_space<vmem>>, vector<1x128xf32>
    tpu.vector_store %arg10[%c0_23, %c0_24], %29 {strides = array<i32>} : memref<1x128xf32, #tpu.memory_space<vmem>>, vector<1x128xf32>,
    return
  }
  func.func @transform_0(%arg0: i32) -> (i32, i32) {
    %c0_i32 = arith.constant 0 : i32
    %c0_i32_0 = arith.constant 0 : i32
    return %c0_i32, %arg0 : i32, i32
  }
  func.func @transform_1(%arg0: i32) -> (i32, i32) {
    %c0_i32 = arith.constant 0 : i32
    %c0_i32_0 = arith.constant 0 : i32
    %c0_i32_1 = arith.constant 0 : i32
    return %c0_i32, %c0_i32_0 : i32, i32
  }
  func.func @transform_2(%arg0: i32) -> (i32, i32) {
    %c0_i32 = arith.constant 0 : i32
    %c0_i32_0 = arith.constant 0 : i32
    %c0_i32_1 = arith.constant 0 : i32
    return %c0_i32, %c0_i32_0 : i32, i32
  }
  func.func @transform_3(%arg0: i32) -> (i32, i32) {
    %c0_i32 = arith.constant 0 : i32
    %c0_i32_0 = arith.constant 0 : i32
    %c0_i32_1 = arith.constant 0 : i32
    return %c0_i32, %c0_i32_0 : i32, i32
  }
  func.func @transform_4(%arg0: i32) -> (i32, i32) {
    %c0_i32 = arith.constant 0 : i32
    %c0_i32_0 = arith.constant 0 : i32
    %c0_i32_1 = arith.constant 0 : i32
    return %c0_i32, %c0_i32_0 : i32, i32
  }
  func.func @transform_5(%arg0: i32) -> (i32, i32) {
    %c0_i32 = arith.constant 0 : i32
    %c0_i32_0 = arith.constant 0 : i32
    %c0_i32_1 = arith.constant 0 : i32
    return %c0_i32, %c0_i32_0 : i32, i32
  }
  func.func @transform_6(%arg0: i32) -> (i32, i32) {
    %c0_i32 = arith.constant 0 : i32
    %c0_i32_0 = arith.constant 0 : i32
    %c0_i32_1 = arith.constant 0 : i32
    return %c0_i32, %c0_i32_0 : i32, i32
  }
  func.func @transform_7(%arg0: i32) -> (i32, i32) {
    %c0_i32 = arith.constant 0 : i32
    %c0_i32_0 = arith.constant 0 : i32
    %c0_i32_1 = arith.constant 0 : i32
    return %c0_i32, %c0_i32_0 : i32, i32
  }
  func.func @transform_8(%arg0: i32) -> (i32, i32) {
    %c0_i32 = arith.constant 0 : i32
    %c0_i32_0 = arith.constant 0 : i32
    %c0_i32_1 = arith.constant 0 : i32
    return %c0_i32, %c0_i32_0 : i32, i32
  }
  func.func @transform_9(%arg0: i32) -> (i32, i32) {
    %c0_i32 = arith.constant 0 : i32
    %c0_i32_0 = arith.constant 0 : i32
    return %c0_i32, %arg0 : i32, i32
  }
}

</mosaic_0001>

<bundles_post_ra>
// kernel: tpu_custom_call.1
= control target key start
LH: loop header
LB: loop body
LE: loop exit
PB: predicated region body
PF: predicated region fallthrough
CT: control target
= control target key end

     0   :  { %vm91_vm0 = vcmask 64512   ;;  %v1394_v3 = vmov 0   ;;  %s1930_s0 = inlined_call_operand.vmem [shape: f32[8,4], index: 0, kind: input, shape index: {}]   ;;  %s1931_s1 = inlined_call_operand.vmem [shape: f32[64,8], index: 1, kind: input, shape index: {}]   ;;  %s1932_s2 = inlined_call_operand.vmem [shape: f32[64,1], index: 2, kind: input, shape index: {}]   ;;  %s1933_s3 = inlined_call_operand.vmem [shape: f32[64,64], index: 3, kind: input, shape index: {}]   ;;  %s1934_s4 = inlined_call_operand.vmem [shape: f32[64,1], index: 4, kind: input, shape index: {}]   ;;  %s1935_s5 = inlined_call_operand.vmem [shape: f32[16,64], index: 5, kind: input, shape index: {}]   ;;  %s1936_s6 = inlined_call_operand.vmem [shape: f32[16,1], index: 6, kind: input, shape index: {}]   ;;  %s1937_s7 = inlined_call_operand.vmem [shape: f32[16,1], index: 7, kind: input, shape index: {}]   ;;  %s1938_s8 = inlined_call_operand.<no memory space> [shape: f32[1,1], index: 8, kind: input, shape index: {}]   ;;  %s1939_s9 = inlined_call_operand.hbm [shape: f32[1,4], index: 9, kind: output, shape index: {}]  }
   0x1   :  { %v48_v0 = vld [vmem:[%s1932_s2 + $0x28] sm:$0xff]  ;;  %v34_v1 = vld [vmem:[%s1930_s0] sm:$0xff]  ;;  %1366 = vset.pattern.permute.xlu1 %v1394_v3  ;;  %v42_v6 = vld [vmem:[%s1931_s1 + $0x38] sm:$0xff]  ;;  %1365 = vset.pattern.permute.xlu0 %v1394_v3 }
   0x2   :  { %v35_v2 = vld [vmem:[%s1931_s1] sm:$0xff]  ;;  %v131_v4 = vand.u32 4294901760, %v34_v1  ;;  %v50_v7 = vld [vmem:[%s1932_s2 + $0x38] sm:$0xff]  ;;  %78 = vperm.xlu1 %1366, %v48_v0   ;;  %v114_v9 = vsel %vm91_vm0, %v42_v6, 0  ;;  %v36_v10 = vld [vmem:[%s1931_s1 + $0x8] sm:$0xff]  ;;  %1367 = vset.pattern.permute.xlu2 %v1394_v3 }
   0x3   :  { %v93_v5 = vsel %vm91_vm0, %v35_v2, 0  ;;  %88 = vperm.xlu0 %1365, %v50_v7   ;;  %v1468_v11 = vand.u32 4294901760, %v114_v9  ;;  %v96_v13 = vsel %vm91_vm0, %v36_v10, 0  ;;  %v37_v14 = vld [vmem:[%s1931_s1 + $0x10] sm:$0xff] }
   0x4   :  { %v1462_v8 = vand.u32 4294901760, %v93_v5  ;;  %132 = vmatpush.msra.mxu0 %v131_v4  ;;  %1361 = vmatpush.msra.mxu2 %v131_v4  ;;  %v214_v12 = vsub.f32 %v34_v1, %v131_v4  ;;  %v1475_v16 = vand.u32 4294901760, %v96_v13 }
   0x6   :  { %v134_v15 = vsub.f32 %v93_v5, %v1462_v8 }
   0x7   :  { %15 = vsyncpa [#allocation4], 0  ;;  %v1478_v17 = vsub.f32 %v114_v9, %v1468_v11  ;;  %v215_v18 = vand.u32 4294901760, %v214_v12  ;;  %269 = vmatpush.msrb.mxu2 %v214_v12  ;;  %v99_v19 = vsel %vm91_vm0, %v37_v14, 0  ;;  %v142_v21 = vsub.f32 %v96_v13, %v1475_v16  ;;  %v47_v24 = vld [vmem:[%s1932_s2 + $0x20] sm:$0xff]  ;;  %v49_v25 = vld [vmem:[%s1932_s2 + $0x30] sm:$0xff] }
   0x8   :  { %v135_v20 = vand.u32 4294901760, %v134_v15  ;;  %v1489_v28 = vand.u32 4294901760, %v99_v19  ;;  %v38_v32 = vld [vmem:[%s1931_s1 + $0x18] sm:$0xff]  ;;  %v43_v37 = vld [vmem:[%s1932_s2] sm:$0xff]  ;;  %v44_v38 = vld [vmem:[%s1932_s2 + $0x8] sm:$0xff]  ;;  %vm543_vm1 = vcmask 523264  }
   0x9   :  { %v191_v22 = vand.u32 4294901760, %v1478_v17  ;;  %v216_v23 = vsub.f32 %v214_v12, %v215_v18  ;;  %395 = vmatpush.msrb.mxu0 %v215_v18  ;;  %v143_v27 = vand.u32 4294901760, %v142_v21  ;;  %v102_v36 = vsel %vm91_vm0, %v38_v32, 0  ;;  %v39_v42 = vld [vmem:[%s1931_s1 + $0x20] sm:$0xff]  ;;  %v46_v46 = vld [vmem:[%s1932_s2 + $0x18] sm:$0xff]  ;;  %v40_v50 = vld [vmem:[%s1931_s1 + $0x28] sm:$0xff] }
   0xa   :  { %v136_v26 = vsub.f32 %v134_v15, %v135_v20  ;;  %73 = vperm.xlu1 %1366, %v47_v24   ;;  %v150_v35 = vsub.f32 %v99_v19, %v1489_v28  ;;  %v1507_v41 = vand.u32 4294901760, %v102_v36  ;;  %v105_v45 = vsel %vm91_vm0, %v39_v42, 0  ;;  %68 = vperm.xlu2 %1367, %v46_v46   ;;  %v45_v54 = vld [vmem:[%s1932_s2 + $0x10] sm:$0xff]  ;;  %v500_v9 = vld [vmem:[%s1934_s4 + $0x28] sm:$0xff]  ;;  %v498_v10 = vld [vmem:[%s1934_s4 + $0x18] sm:$0xff]  ;;  %s1395_s14 = smov [#allocation3]  }
   0xb   :  { %v192_v29 = vsub.f32 %v1478_v17, %v191_v22  ;;  %v217_v30 = vand.u32 4294901760, %v216_v23  ;;  %83 = vperm.xlu0 %1365, %v49_v25   ;;  %v144_v34 = vsub.f32 %v142_v21, %v143_v27  ;;  %v1518_v49 = vand.u32 4294901760, %v105_v45  ;;  %v41_v58 = vld [vmem:[%s1931_s1 + $0x30] sm:$0xff]  ;;  %v495_v12 = vld [vmem:[%s1934_s4] sm:$0xff]  ;;  %v496_v18 = vld [vmem:[%s1934_s4 + $0x8] sm:$0xff]  ;;  %s1350_s15 = sshll.u32 %s1395_s14, 4  ;;  %s1351_s15 = int_to_ptr.vmem [resolvable:$true] %s1350_s15 }
   0xc   :  { %v137_v31 = vand.u32 4294901760, %v136_v26  ;;  %v151_v40 = vand.u32 4294901760, %v150_v35  ;;  %v158_v44 = vsub.f32 %v102_v36, %v1507_v41  ;;  %v108_v53 = vsel %vm91_vm0, %v40_v50, 0  ;;  %v501_v7 = vld [vmem:[%s1934_s4 + $0x30] sm:$0xff]  ;;  %v1032_v13 = vld [vmem:[%s1936_s6] sm:$0xff]  ;;  %v1033_v19 = vld [vmem:[%s1936_s6 + $0x8] sm:$0xff] }
   0xd   :  { %v193_v33 = vand.u32 4294901760, %v192_v29  ;;  %218 = vmatpush.msra.mxu1 %v217_v30  ;;  %1362 = vmatpush.msra.mxu3 %v217_v30  ;;  %v145_v39 = vand.u32 4294901760, %v144_v34  ;;  %v166_v52 = vsub.f32 %v105_v45, %v1518_v49  ;;  %v1529_v57 = vand.u32 4294901760, %v108_v53  ;;  %v1320_v14 = vld [vmem:[%s1937_s7] sm:$0xff]  ;;  %s1352_s17 = sshll.u32 %s1939_s9, 4  ;;  %s1353_s17 = int_to_ptr.hbm [resolvable:$true] %s1352_s17 }
   0xe   :  { %138 = vmatmul.f32.vlgmr.msra.gmra.mxu0 %v137_v31  ;;  %220 = vmatmul.f32.vlgmr.msra.gmra.mxu1 %v1462_v8  ;;  %v152_v43 = vsub.f32 %v150_v35, %v151_v40  ;;  %v159_v48 = vand.u32 4294901760, %v158_v44  ;;  %v111_v61 = vsel %vm91_vm0, %v41_v58, 0 }
   0xf   :  { %194 = vmatmul.f32.vlgmr.msra.gmra.mxu2 %v193_v33  ;;  %248 = vmatmul.f32.vlgmr.msra.gmra.mxu3 %v1468_v11  ;;  %v167_v56 = vand.u32 4294901760, %v166_v52  ;;  %v174_v60 = vsub.f32 %v108_v53, %v1529_v57  ;;  %v181_v0 = vand.u32 4294901760, %v111_v61 }
  0x10   :  { %327 = vmatpush.msrb.mxu3 %v131_v4  ;;  %445 = vmatpush.msrb.mxu1 %v131_v4  ;;  %v153_v47 = vand.u32 4294901760, %v152_v43  ;;  %v160_v51 = vsub.f32 %v158_v44, %v159_v48 }
  0x11   :  { %v168_v59 = vsub.f32 %v166_v52, %v167_v56  ;;  %v175_v63 = vand.u32 4294901760, %v174_v60  ;;  %v182_v2 = vsub.f32 %v111_v61, %v181_v0 }
  0x12   :  { %53 = vperm.xlu1 %1366, %v43_v37   ;;  %63 = vperm.xlu2 %1367, %v45_v54   ;;  %v161_v55 = vand.u32 4294901760, %v160_v51 }
  0x13   :  { %58 = vperm.xlu0 %1365, %v44_v38   ;;  %v169_v62 = vand.u32 4294901760, %v168_v59  ;;  %v176_v1 = vsub.f32 %v174_v60, %v175_v63  ;;  %v183_v4 = vand.u32 4294901760, %v182_v2 }
  0x15   :  { %v177_v3 = vand.u32 4294901760, %v176_v1  ;;  %v184_v5 = vsub.f32 %v182_v2, %v183_v4 }
  0x16   :  { %146 = vmatmul.f32.gmra.mxu0 %v145_v39  ;;  %224 = vmatmul.f32.gmra.mxu1 %v1475_v16 }
  0x17   :  { %272 = vmatmul.f32.vlgmr.msrb.gmra.mxu2 %v134_v15  ;;  %331 = vmatmul.f32.vlgmr.msrb.gmra.mxu3 %v135_v20  ;;  %v185_v6 = vand.u32 4294901760, %v184_v5  ;;  %v1321_v15 = vld [vmem:[%s1937_s7 + $0x8] sm:$0xff] }
  0x1a   :  { %530 = vperm.xlu1 %1366, %v500_v9  }
  0x1b   :  { %535 = vperm.xlu0 %1365, %v501_v7  }
  0x1e   :  { %154 = vmatmul.f32.gmra.mxu0 %v153_v47  ;;  %228 = vmatmul.f32.gmra.mxu1 %v1489_v28 }
  0x1f   :  { %277 = vmatmul.f32.gmra.mxu2 %v142_v21  ;;  %337 = vmatmul.f32.gmra.mxu3 %v143_v27 }
  0x23   :  { %520 = vperm.xlu0 %1365, %v498_v10  }
  0x26   :  { %162 = vmatmul.f32.gmra.mxu0 %v161_v55  ;;  %232 = vmatmul.f32.gmra.mxu1 %v1507_v41 }
  0x27   :  { %282 = vmatmul.f32.gmra.mxu2 %v150_v35  ;;  %343 = vmatmul.f32.gmra.mxu3 %v151_v40 }
  0x2b   :  { %505 = vperm.xlu0 %1365, %v495_v12  }
  0x2e   :  { %170 = vmatmul.f32.gmra.mxu0 %v169_v62  ;;  %236 = vmatmul.f32.gmra.mxu1 %v1518_v49 }
  0x2f   :  { %287 = vmatmul.f32.gmra.mxu2 %v158_v44  ;;  %349 = vmatmul.f32.gmra.mxu3 %v159_v48 }
  0x33   :  { %1324 = vperm.xlu0 %1365, %v1320_v14  }
  0x36   :  { %178 = vmatmul.f32.gmra.mxu0 %v177_v3  ;;  %240 = vmatmul.f32.gmra.mxu1 %v1529_v57 }
  0x37   :  { %292 = vmatmul.f32.gmra.mxu2 %v166_v52  ;;  %355 = vmatmul.f32.gmra.mxu3 %v167_v56 }
  0x3e   :  { %186 = vmatmul.f32.gmra.mxu0 %v185_v6  ;;  %244 = vmatmul.f32.gmra.mxu1 %v181_v0 }
  0x3f   :  { %297 = vmatmul.f32.gmra.mxu2 %v174_v60  ;;  %361 = vmatmul.f32.gmra.mxu3 %v175_v63 }
  0x46   :  { %397 = vmatmul.f32.vlgmr.msrb.gmra.mxu0 %v1462_v8  ;;  %447 = vmatmul.f32.vlgmr.msrb.gmra.mxu1 %v1462_v8  ;;  %v497_v8 = vld [vmem:[%s1934_s4 + $0x10] sm:$0xff] }
  0x47   :  { %302 = vmatmul.f32.gmra.mxu2 %v182_v2  ;;  %367 = vmatmul.f32.gmra.mxu3 %v183_v4 }
  0x48   :  { %515 = vperm.xlu1 %1366, %v497_v8  }
  0x4e   :  { %401 = vmatmul.f32.gmra.mxu0 %v1475_v16  ;;  %451 = vmatmul.f32.gmra.mxu1 %v1475_v16  ;;  %v502_v16 = vld [vmem:[%s1934_s4 + $0x38] sm:$0xff] }
  0x4f   :  { %307 = vmatmul.f32.gmra.mxu2 %v1478_v17  ;;  %373 = vmatmul.f32.gmra.mxu3 %v191_v22  ;;  %v499_v17 = vld [vmem:[%s1934_s4 + $0x20] sm:$0xff] }
  0x50   :  { %1036 = vperm.xlu1 %1366, %v1032_v13   ;;  %540 = vperm.xlu2 %1367, %v502_v16  }
  0x56   :  { %405 = vmatmul.f32.gmra.mxu0 %v1489_v28  ;;  %455 = vmatmul.f32.gmra.mxu1 %v1489_v28 }
  0x58   :  { %1329 = vperm.xlu1 %1366, %v1321_v15   ;;  %525 = vperm.xlu2 %1367, %v499_v17  }
  0x5e   :  { %409 = vmatmul.f32.gmra.mxu0 %v1507_v41  ;;  %459 = vmatmul.f32.gmra.mxu1 %v1507_v41 }
  0x60   :  { %510 = vperm.xlu2 %1367, %v496_v18  }
  0x64   :  { %v69_v28 = vpop.permute.xlu2 %68 }
  0x66   :  { %413 = vmatmul.f32.gmra.mxu0 %v1518_v49  ;;  %463 = vmatmul.f32.gmra.mxu1 %v1518_v49 }
  0x68   :  { %1041 = vperm.xlu2 %1367, %v1033_v19  }
  0x6c   :  { %v64_v12 = vpop.permute.xlu2 %63 }
  0x6e   :  { %417 = vmatmul.f32.gmra.mxu0 %v1529_v57  ;;  %467 = vmatmul.f32.gmra.mxu1 %v1529_v57 }
  0x74   :  { %v79_v26 = vpop.permute.xlu1 %78 }
  0x75   :  { %v89_v2 = vpop.permute.xlu0 %88 }
  0x76   :  { %421 = vmatmul.f32.gmra.mxu0 %v181_v0  ;;  %471 = vmatmul.f32.gmra.mxu1 %v181_v0 }
  0x7d   :  { %v84_v7 = vpop.permute.xlu0 %83 }
  0x7e   :  { %425 = vmatmul.f32.gmra.mxu0 %v1468_v11  ;;  %475 = vmatmul.f32.gmra.mxu1 %v1468_v11  ;;  %v74_v11 = vpop.permute.xlu1 %73 }
  0x85   :  { %v59_v15 = vpop.permute.xlu0 %58 }
  0x86   :  { %v54_v43 = vpop.permute.xlu1 %53 }
  0x8b   :  { %v139_v20 = vpop.f32.mrf.mxu0  ;;  %v221_v21 = vpop.f32.mrf.mxu1 }
  0x8c   :  { %v140_v46 = vadd.f32 %v139_v20, %v54_v43 }
  0x8e   :  { %v222_v50 = vadd.f32 %v221_v21, %v140_v46 }
  0x92   :  { %v1598_v27 = vpop.f32.mrf.mxu2  ;;  %v1600_v32 = vpop.f32.mrf.mxu3 }
  0x93   :  { %v1592_v22 = vpop.f32.mrf.mxu0  ;;  %v1594_v23 = vpop.f32.mrf.mxu1 }
  0x94   :  { %v148_v21 = vadd.f32 %v1592_v22, %v59_v15 }
  0x9a   :  { %v273_v36 = vpop.f32.mrf.mxu2  ;;  %v332_v39 = vpop.f32.mrf.mxu3 }
  0x9b   :  { %v155_v24 = vpop.f32.mrf.mxu0  ;;  %v1596_v25 = vpop.f32.mrf.mxu1  ;;  %v274_v51 = vadd.f32 %v273_v36, %v222_v50 }
  0x9c   :  { %v156_v16 = vadd.f32 %v155_v24, %v64_v12 }
  0x9d   :  { %v333_v53 = vadd.f32 %v332_v39, %v274_v51 }
  0xa2   :  { %v278_v44 = vpop.f32.mrf.mxu2  ;;  %v1602_v47 = vpop.f32.mrf.mxu3 }
  0xa3   :  { %v163_v29 = vpop.f32.mrf.mxu0  ;;  %v233_v30 = vpop.f32.mrf.mxu1 }
  0xa4   :  { %v164_v31 = vadd.f32 %v163_v29, %v69_v28 }
  0xa6   :  { %v234_v33 = vadd.f32 %v233_v30, %v164_v31  ;;  %v230_v30 = vadd.f32 %v1596_v25, %v156_v16  ;;  %v196_v31 = vadd.f32 %v1598_v27, %v89_v2 }
  0xaa   :  { %v283_v52 = vpop.f32.mrf.mxu2  ;;  %v344_v56 = vpop.f32.mrf.mxu3 }
  0xab   :  { %v171_v34 = vpop.f32.mrf.mxu0  ;;  %v237_v35 = vpop.f32.mrf.mxu1  ;;  %v284_v36 = vadd.f32 %v283_v52, %v230_v30 }
  0xac   :  { %v172_v37 = vadd.f32 %v171_v34, %v74_v11 }
  0xad   :  { %v345_v25 = vadd.f32 %v344_v56, %v284_v36 }
  0xae   :  { %v238_v38 = vadd.f32 %v237_v35, %v172_v37  ;;  %v226_v35 = vadd.f32 %v1594_v23, %v148_v21 }
  0xb2   :  { %v288_v59 = vpop.f32.mrf.mxu2  ;;  %v350_v62 = vpop.f32.mrf.mxu3 }
  0xb3   :  { %v179_v40 = vpop.f32.mrf.mxu0  ;;  %v241_v41 = vpop.f32.mrf.mxu1  ;;  %v289_v11 = vadd.f32 %v288_v59, %v234_v33 }
  0xb4   :  { %v180_v42 = vadd.f32 %v179_v40, %v79_v26 }
  0xb6   :  { %v242_v45 = vadd.f32 %v241_v41, %v180_v42  ;;  %v279_v41 = vadd.f32 %v278_v44, %v226_v35 }
  0xb8   :  { %v339_v23 = vadd.f32 %v1602_v47, %v279_v41 }
  0xba   :  { %v293_v1 = vpop.f32.mrf.mxu2  ;;  %v356_v3 = vpop.f32.mrf.mxu3 }
  0xbb   :  { %v187_v48 = vpop.f32.mrf.mxu0  ;;  %v245_v49 = vpop.f32.mrf.mxu1  ;;  %v294_v26 = vadd.f32 %v293_v1, %v238_v38  ;;  %v250_v38 = vadd.f32 %v1600_v32, %v196_v31  ;;  %v487_v32 = vld [vmem:[%s1933_s3] sm:$0xff] }
  0xbc   :  { %v188_v13 = vadd.f32 %v187_v48, %v84_v7 }
  0xbd   :  { %v357_v37 = vadd.f32 %v356_v3, %v294_v26 }
  0xbe   :  { %v246_v19 = vadd.f32 %v245_v49, %v188_v13 }
  0xc2   :  { %v298_v6 = vpop.f32.mrf.mxu2  ;;  %v362_v9 = vpop.f32.mrf.mxu3 }
  0xc3   :  { %v398_v54 = vpop.f32.mrf.mxu0  ;;  %v448_v55 = vpop.f32.mrf.mxu1  ;;  %v299_v20 = vadd.f32 %v298_v6, %v242_v45  ;;  %v351_v45 = vadd.f32 %v350_v62, %v289_v11 }
  0xc4   :  { %v399_v57 = vadd.f32 %v398_v54, %v333_v53 }
  0xc5   :  { %v363_v34 = vadd.f32 %v362_v9, %v299_v20 }
  0xc6   :  { %v1604_v58 = vadd.f32 %v448_v55, %v399_v57 }
  0xc8   :  { %v479_v15 = vmax.f32 %v1604_v58, 0.0 }
  0xca   :  { %v303_v14 = vpop.f32.mrf.mxu2  ;;  %v368_v28 = vpop.f32.mrf.mxu3  ;;  %v1665_v30 = vand.u32 4294901760, %v479_v15 }
  0xcb   :  { %v402_v60 = vpop.f32.mrf.mxu0  ;;  %v1606_v61 = vpop.f32.mrf.mxu1  ;;  %v304_v29 = vadd.f32 %v303_v14, %v246_v19  ;;  %v488_v14 = vld [vmem:[%s1933_s3 + $0x8] sm:$0xff] }
  0xcc   :  { %v403_v54 = vadd.f32 %v402_v60, %v339_v23  ;;  %v548_v21 = vsel %vm543_vm1, %v488_v14, 0 }
  0xcd   :  { %v369_v24 = vadd.f32 %v368_v28, %v304_v29 }
  0xce   :  { %v453_v3 = vadd.f32 %v1606_v61, %v403_v54 }
  0xd2   :  { %v308_v39 = vpop.f32.mrf.mxu2  ;;  %v374_v50 = vpop.f32.mrf.mxu3 }
  0xd3   :  { %v406_v63 = vpop.f32.mrf.mxu0  ;;  %v456_v0 = vpop.f32.mrf.mxu1  ;;  %v309_v48 = vadd.f32 %v308_v39, %v250_v38 }
  0xd4   :  { %v407_v51 = vadd.f32 %v406_v63, %v345_v25  ;;  %v545_v63 = vsel %vm543_vm1, %v487_v32, 0 }
  0xd5   :  { %v375_v44 = vadd.f32 %v374_v50, %v309_v48 }
  0xd6   :  { %v457_v56 = vadd.f32 %v456_v0, %v407_v51 }
  0xd8   :  { %v481_v6 = vmax.f32 %v457_v56, 0.0 }
  0xda   :  { %v1641_v16 = vand.u32 4294901760, %v481_v6 }
  0xdb   :  { %v410_v4 = vpop.f32.mrf.mxu0  ;;  %v460_v5 = vpop.f32.mrf.mxu1 }
  0xdc   :  { %v411_v27 = vadd.f32 %v410_v4, %v351_v45  ;;  %v1668_v31 = vsub.f32 %v481_v6, %v1641_v16  ;;  %v491_v6 = vld [vmem:[%s1933_s3 + $0x20] sm:$0xff] }
  0xde   :  { %v461_v55 = vadd.f32 %v460_v5, %v411_v27 }
  0xe0   :  { %v482_v60 = vmax.f32 %v461_v55, 0.0 }
  0xe2   :  { %v1630_v12 = vand.u32 4294901760, %v482_v60 }
  0xe3   :  { %v414_v10 = vpop.f32.mrf.mxu0  ;;  %v464_v8 = vpop.f32.mrf.mxu1 }
  0xe4   :  { %v415_v42 = vadd.f32 %v414_v10, %v357_v37  ;;  %v1628_v10 = vand.u32 4294901760, %v545_v63  ;;  %v1659_v26 = vsub.f32 %v482_v60, %v1630_v12  ;;  %v1681_v37 = vand.u32 4294901760, %v548_v21 }
  0xe6   :  { %v465_v52 = vadd.f32 %v464_v8, %v415_v42  ;;  %v480_v8 = vmax.f32 %v453_v3, 0.0  ;;  %v1653_v20 = vsub.f32 %v545_v63, %v1628_v10  ;;  %v691_v41 = vand.u32 4294901760, %v1659_v26  ;;  %v489_v42 = vld [vmem:[%s1933_s3 + $0x10] sm:$0xff] }
  0xe7   :  { %v601_v25 = vsub.f32 %v548_v21, %v1681_v37  ;;  %v551_v48 = vsel %vm543_vm1, %v489_v42, 0 }
  0xe8   :  { %v483_v59 = vmax.f32 %v465_v52, 0.0  ;;  %v1656_v58 = vand.u32 4294901760, %v480_v8  ;;  %v594_v36 = vand.u32 4294901760, %v1653_v20  ;;  %v1722_v54 = vand.u32 4294901760, %v551_v48 }
  0xea   :  { %v1623_v7 = vand.u32 4294901760, %v483_v59 }
  0xeb   :  { %v418_v17 = vpop.f32.mrf.mxu0  ;;  %v468_v18 = vpop.f32.mrf.mxu1 }
  0xec   :  { %v419_v40 = vadd.f32 %v418_v17, %v363_v34  ;;  %v1644_v17 = vsub.f32 %v483_v59, %v1623_v7 }
  0xee   :  { %v469_v33 = vadd.f32 %v468_v18, %v419_v40  ;;  %v685_v11 = vand.u32 4294901760, %v1644_v17 }
  0xf0   :  { %v484_v57 = vmax.f32 %v469_v33, 0.0  ;;  %v686_v45 = vsub.f32 %v1644_v17, %v685_v11  ;;  %v692_v33 = vsub.f32 %v1659_v26, %v691_v41 }
  0xf2   :  { %v1621_v4 = vand.u32 4294901760, %v484_v57  ;;  %v687_v51 = vand.u32 4294901760, %v686_v45 }
  0xf3   :  { %v422_v43 = vpop.f32.mrf.mxu0  ;;  %v472_v22 = vpop.f32.mrf.mxu1 }
  0xf4   :  { %v423_v46 = vadd.f32 %v422_v43, %v369_v24  ;;  %v1633_v13 = vsub.f32 %v484_v57, %v1621_v4  ;;  %v1685_v24 = vsub.f32 %v480_v8, %v1656_v58  ;;  %v1697_v43 = vsub.f32 %v479_v15, %v1665_v30  ;;  %v490_v57 = vld [vmem:[%s1933_s3 + $0x18] sm:$0xff]  ;;  %v492_v15 = vld [vmem:[%s1933_s3 + $0x28] sm:$0xff] }
  0xf5   :  { %v557_v8 = vsel %vm543_vm1, %v491_v6, 0 }
  0xf6   :  { %v473_v49 = vadd.f32 %v472_v22, %v423_v46  ;;  %v679_v29 = vand.u32 4294901760, %v1633_v13  ;;  %v697_v22 = vand.u32 4294901760, %v1668_v31  ;;  %v595_v46 = vsub.f32 %v1653_v20, %v594_v36 }
  0xf7   :  { %v709_v50 = vand.u32 4294901760, %v1697_v43 }
  0xf8   :  { %v485_v53 = vmax.f32 %v473_v49, 0.0  ;;  %v680_v40 = vsub.f32 %v1633_v13, %v679_v29  ;;  %v703_v49 = vand.u32 4294901760, %v1685_v24  ;;  %v698_v23 = vsub.f32 %v1668_v31, %v697_v22 }
  0xf9   :  { %v596_v52 = vand.u32 4294901760, %v595_v46  ;;  %v710_v56 = vsub.f32 %v1697_v43, %v709_v50 }
  0xfa   :  { %v1617_v2 = vand.u32 4294901760, %v485_v53  ;;  %v681_v27 = vand.u32 4294901760, %v680_v40  ;;  %v704_v55 = vsub.f32 %v1685_v24, %v703_v49  ;;  %v699_v32 = vand.u32 4294901760, %v698_v23 }
  0xfb   :  { %v426_v62 = vpop.f32.mrf.mxu0  ;;  %v476_v1 = vpop.f32.mrf.mxu1  ;;  %v711_v63 = vand.u32 4294901760, %v710_v56 }
  0xfc   :  { %v427_v47 = vadd.f32 %v426_v62, %v375_v44  ;;  %v1626_v9 = vsub.f32 %v485_v53, %v1617_v2  ;;  %v602_v53 = vand.u32 4294901760, %v601_v25  ;;  %v693_v44 = vand.u32 4294901760, %v692_v33 }
  0xfd   :  { %v609_v62 = vsub.f32 %v551_v48, %v1722_v54 }
  0xfe   :  { %v477_v5 = vadd.f32 %v476_v1, %v427_v47  ;;  %v673_v19 = vand.u32 4294901760, %v1626_v9  ;;  %v603_v59 = vsub.f32 %v601_v25, %v602_v53  ;;  %v554_v1 = vsel %vm543_vm1, %v490_v57, 0 }
  0xff   :  { %v705_v47 = vand.u32 4294901760, %v704_v55  ;;  %v610_v60 = vand.u32 4294901760, %v609_v62 }
 0x100   :  { %v486_v0 = vmax.f32 %v477_v5, 0.0  ;;  %v674_v35 = vsub.f32 %v1626_v9, %v673_v19  ;;  %v604_v3 = vand.u32 4294901760, %v603_v59  ;;  %v1742_v5 = vand.u32 4294901760, %v554_v1 }
 0x102   :  { %v1635_v61 = vand.u32 4294901760, %v486_v0  ;;  %v675_v38 = vand.u32 4294901760, %v674_v35 }
 0x104   :  { %v1647_v18 = vsub.f32 %v486_v0, %v1635_v61  ;;  %577 = vmatpush.msra.mxu2 %v1635_v61  ;;  %828 = vmatpush.msra.mxu1 %v1635_v61  ;;  %v617_v0 = vsub.f32 %v554_v1, %v1742_v5 }
 0x106   :  { %v667_v28 = vand.u32 4294901760, %v1647_v18  ;;  %579 = vmatpush.msra.mxu2 %v1617_v2  ;;  %756 = vmatpush.msra.mxu0 %v1647_v18  ;;  %v618_v14 = vand.u32 4294901760, %v617_v0 }
 0x107   :  { %830 = vmatpush.msra.mxu1 %v1617_v2 }
 0x108   :  { %v668_v34 = vsub.f32 %v1647_v18, %v667_v28  ;;  %581 = vmatpush.msra.mxu2 %v1621_v4  ;;  %759 = vmatpush.msra.mxu0 %v1626_v9  ;;  %v611_v9 = vsub.f32 %v609_v62, %v610_v60 }
 0x109   :  { %832 = vmatpush.msra.mxu1 %v1621_v4 }
 0x10a   :  { %583 = vmatpush.msra.mxu2 %v1623_v7  ;;  %762 = vmatpush.msra.mxu0 %v1633_v13  ;;  %v669_v39 = vand.u32 4294901760, %v668_v34  ;;  %v612_v13 = vand.u32 4294901760, %v611_v9 }
 0x10b   :  { %834 = vmatpush.msra.mxu1 %v1623_v7 }
 0x10c   :  { %585 = vmatpush.msra.mxu2 %v1630_v12  ;;  %670 = vmatpush.msra.mxu3 %v669_v39 }
 0x10d   :  { %765 = vmatpush.msra.mxu0 %v1644_v17  ;;  %836 = vmatpush.msra.mxu1 %v1630_v12  ;;  %v560_v17 = vsel %vm543_vm1, %v492_v15, 0 }
 0x10e   :  { %587 = vmatpush.msra.mxu2 %v1641_v16  ;;  %676 = vmatpush.msra.mxu3 %v675_v38 }
 0x10f   :  { %768 = vmatpush.msra.mxu0 %v1659_v26  ;;  %838 = vmatpush.msra.mxu1 %v1641_v16 }
 0x110   :  { %589 = vmatpush.msra.mxu2 %v1656_v58  ;;  %682 = vmatpush.msra.mxu3 %v681_v27 }
 0x111   :  { %771 = vmatpush.msra.mxu0 %v1668_v31  ;;  %840 = vmatpush.msra.mxu1 %v1656_v58 }
 0x112   :  { %591 = vmatpush.msra.mxu2 %v1665_v30  ;;  %688 = vmatpush.msra.mxu3 %v687_v51  ;;  %v531_v51 = vpop.permute.xlu1 %530 }
 0x113   :  { %774 = vmatpush.msra.mxu0 %v1685_v24  ;;  %842 = vmatpush.msra.mxu1 %v1665_v30 }
 0x114   :  { %597 = vmatmul.f32.vlgmr.msra.gmra.mxu2 %v596_v52  ;;  %694 = vmatpush.msra.mxu3 %v693_v44 }
 0x115   :  { %903 = vmatpush.msrb.mxu2 %v667_v28  ;;  %777 = vmatpush.msra.mxu0 %v1697_v43 }
 0x116   :  { %700 = vmatpush.msra.mxu3 %v699_v32  ;;  %780 = vmatmul.f32.vlgmr.msra.gmra.mxu0 %v1653_v20 }
 0x117   :  { %907 = vmatpush.msrb.mxu2 %v673_v19  ;;  %846 = vmatmul.f32.vlgmr.msra.gmra.mxu1 %v594_v36  ;;  %v632_v19 = vand.u32 4294901760, %v560_v17 }
 0x118   :  { %706 = vmatpush.msra.mxu3 %v705_v47 }
 0x119   :  { %911 = vmatpush.msrb.mxu2 %v679_v29  ;;  %v633_v21 = vsub.f32 %v560_v17, %v632_v19  ;;  %v494_v29 = vld [vmem:[%s1933_s3 + $0x38] sm:$0xff] }
 0x11a   :  { %712 = vmatpush.msra.mxu3 %v711_v63  ;;  %v516_v32 = vpop.permute.xlu1 %515 }
 0x11b   :  { %915 = vmatpush.msrb.mxu2 %v685_v11  ;;  %714 = vmatmul.f32.vlgmr.msra.gmra.mxu3 %v1628_v10  ;;  %v566_v11 = vsel %vm543_vm1, %v494_v29, 0 }
 0x11c   :  { %605 = vmatmul.f32.gmra.mxu2 %v604_v3  ;;  %974 = vmatpush.msrb.mxu3 %v1635_v61  ;;  %v1761_v61 = vand.u32 4294901760, %v557_v8  ;;  %v648_v36 = vand.u32 4294901760, %v566_v11 }
 0x11d   :  { %919 = vmatpush.msrb.mxu2 %v691_v41 }
 0x11e   :  { %976 = vmatpush.msrb.mxu3 %v1617_v2  ;;  %785 = vmatmul.f32.gmra.mxu0 %v601_v25  ;;  %v619_v2 = vsub.f32 %v617_v0, %v618_v14  ;;  %v649_v39 = vsub.f32 %v566_v11, %v648_v36 }
 0x11f   :  { %923 = vmatpush.msrb.mxu2 %v697_v22  ;;  %852 = vmatmul.f32.gmra.mxu1 %v602_v53  ;;  %v1795_v22 = vpop.permute.xlu2 %540 }
 0x120   :  { %978 = vmatpush.msrb.mxu3 %v1621_v4  ;;  %v625_v4 = vsub.f32 %v557_v8, %v1761_v61  ;;  %v650_v41 = vand.u32 4294901760, %v649_v39 }
 0x121   :  { %927 = vmatpush.msrb.mxu2 %v703_v49 }
 0x122   :  { %980 = vmatpush.msrb.mxu3 %v1623_v7  ;;  %v620_v7 = vand.u32 4294901760, %v619_v2  ;;  %v626_v18 = vand.u32 4294901760, %v625_v4  ;;  %v651_v42 = vsub.f32 %v649_v39, %v650_v41 }
 0x123   :  { %931 = vmatpush.msrb.mxu2 %v709_v50  ;;  %718 = vmatmul.f32.gmra.mxu3 %v1681_v37 }
 0x124   :  { %613 = vmatmul.f32.gmra.mxu2 %v612_v13  ;;  %982 = vmatpush.msrb.mxu3 %v1630_v12  ;;  %v493_v12 = vld [vmem:[%s1933_s3 + $0x30] sm:$0xff]  ;;  %v627_v20 = vsub.f32 %v625_v4, %v626_v18  ;;  %v652_v43 = vand.u32 4294901760, %v651_v42 }
 0x126   :  { %984 = vmatpush.msrb.mxu3 %v1641_v16  ;;  %790 = vmatmul.f32.gmra.mxu0 %v609_v62  ;;  %v563_v16 = vsel %vm543_vm1, %v493_v12, 0  ;;  %v628_v26 = vand.u32 4294901760, %v627_v20 }
 0x127   :  { %858 = vmatmul.f32.gmra.mxu1 %v610_v60  ;;  %v640_v28 = vand.u32 4294901760, %v563_v16  ;;  %v526_v45 = vpop.permute.xlu2 %525 }
 0x128   :  { %986 = vmatpush.msrb.mxu3 %v1656_v58  ;;  %v634_v58 = vand.u32 4294901760, %v633_v21 }
 0x129   :  { %v641_v31 = vsub.f32 %v563_v16, %v640_v28 }
 0x12a   :  { %988 = vmatpush.msrb.mxu3 %v1665_v30  ;;  %v635_v30 = vsub.f32 %v633_v21, %v634_v58 }
 0x12b   :  { %722 = vmatmul.f32.gmra.mxu3 %v1722_v54  ;;  %v642_v35 = vand.u32 4294901760, %v641_v31 }
 0x12c   :  { %621 = vmatmul.f32.gmra.mxu2 %v620_v7  ;;  %v636_v34 = vand.u32 4294901760, %v635_v30 }
 0x12d   :  { %v643_v24 = vsub.f32 %v641_v31, %v642_v35 }
 0x12e   :  { %795 = vmatmul.f32.gmra.mxu0 %v617_v0 }
 0x12f   :  { %864 = vmatmul.f32.gmra.mxu1 %v618_v14  ;;  %v644_v40 = vand.u32 4294901760, %v643_v24  ;;  %v511_v53 = vpop.permute.xlu2 %510 }
 0x133   :  { %726 = vmatmul.f32.gmra.mxu3 %v1742_v5 }
 0x134   :  { %629 = vmatmul.f32.gmra.mxu2 %v628_v26 }
 0x136   :  { %800 = vmatmul.f32.gmra.mxu0 %v625_v4 }
 0x137   :  { %870 = vmatmul.f32.gmra.mxu1 %v626_v18 }
 0x13b   :  { %730 = vmatmul.f32.gmra.mxu3 %v1761_v61 }
 0x13c   :  { %637 = vmatmul.f32.gmra.mxu2 %v636_v34 }
 0x13e   :  { %805 = vmatmul.f32.gmra.mxu0 %v633_v21 }
 0x13f   :  { %876 = vmatmul.f32.gmra.mxu1 %v634_v58 }
 0x143   :  { %734 = vmatmul.f32.gmra.mxu3 %v632_v19 }
 0x144   :  { %645 = vmatmul.f32.gmra.mxu2 %v644_v40 }
 0x146   :  { %810 = vmatmul.f32.gmra.mxu0 %v641_v31 }
 0x147   :  { %882 = vmatmul.f32.gmra.mxu1 %v642_v35 }
 0x14b   :  { %738 = vmatmul.f32.gmra.mxu3 %v640_v28 }
 0x14c   :  { %653 = vmatmul.f32.gmra.mxu2 %v652_v43 }
 0x14e   :  { %815 = vmatmul.f32.gmra.mxu0 %v649_v39 }
 0x14f   :  { %888 = vmatmul.f32.gmra.mxu1 %v650_v41 }
 0x153   :  { %742 = vmatmul.f32.gmra.mxu3 %v648_v36 }
 0x154   :  { %933 = vmatmul.f32.vlgmr.msrb.gmra.mxu2 %v1628_v10 }
 0x15b   :  { %990 = vmatmul.f32.vlgmr.msrb.gmra.mxu3 %v1628_v10  ;;  %v536_v10 = vpop.permute.xlu0 %535 }
 0x15c   :  { %937 = vmatmul.f32.gmra.mxu2 %v1681_v37 }
 0x163   :  { %994 = vmatmul.f32.gmra.mxu3 %v1681_v37  ;;  %v521_v37 = vpop.permute.xlu0 %520 }
 0x164   :  { %941 = vmatmul.f32.gmra.mxu2 %v1722_v54 }
 0x16b   :  { %998 = vmatmul.f32.gmra.mxu3 %v1722_v54  ;;  %v506_v46 = vpop.permute.xlu0 %505 }
 0x16c   :  { %945 = vmatmul.f32.gmra.mxu2 %v1742_v5 }
 0x173   :  { %1002 = vmatmul.f32.gmra.mxu3 %v1742_v5 }
 0x174   :  { %949 = vmatmul.f32.gmra.mxu2 %v1761_v61 }
 0x17b   :  { %1006 = vmatmul.f32.gmra.mxu3 %v1761_v61 }
 0x17c   :  { %953 = vmatmul.f32.gmra.mxu2 %v632_v19 }
 0x183   :  { %1010 = vmatmul.f32.gmra.mxu3 %v632_v19 }
 0x184   :  { %957 = vmatmul.f32.gmra.mxu2 %v640_v28 }
 0x18b   :  { %1014 = vmatmul.f32.gmra.mxu3 %v640_v28 }
 0x18c   :  { %961 = vmatmul.f32.gmra.mxu2 %v648_v36 }
 0x193   :  { %1018 = vmatmul.f32.gmra.mxu3 %v648_v36  ;;  %v781_v27 = vpop.f32.mrf.mxu0 }
 0x194   :  { %v847_v23 = vpop.f32.mrf.mxu1 }
 0x197   :  { %v598_v38 = vpop.f32.mrf.mxu2 }
 0x198   :  { %v599_v25 = vadd.f32 %v598_v38, %v506_v46 }
 0x19b   :  { %v786_v7 = vpop.f32.mrf.mxu0 }
 0x19c   :  { %v853_v18 = vpop.f32.mrf.mxu1 }
 0x19e   :  { %v715_v48 = vpop.f32.mrf.mxu3 }
 0x19f   :  { %v606_v33 = vpop.f32.mrf.mxu2  ;;  %v716_v49 = vadd.f32 %v715_v48, %v599_v25 }
 0x1a0   :  { %v607_v54 = vadd.f32 %v606_v33, %v511_v53 }
 0x1a1   :  { %v782_v50 = vadd.f32 %v781_v27, %v716_v49 }
 0x1a3   :  { %v848_v52 = vadd.f32 %v847_v23, %v782_v50  ;;  %v791_v21 = vpop.f32.mrf.mxu0 }
 0x1a4   :  { %v859_v16 = vpop.f32.mrf.mxu1 }
 0x1a6   :  { %v719_v44 = vpop.f32.mrf.mxu3 }
 0x1a7   :  { %v614_v55 = vpop.f32.mrf.mxu2  ;;  %v1797_v57 = vadd.f32 %v719_v44, %v607_v54 }
 0x1a8   :  { %v615_v56 = vadd.f32 %v614_v55, %v516_v32 }
 0x1a9   :  { %v787_v32 = vadd.f32 %v786_v7, %v1797_v57  ;;  %v1030_v57 = vld [vmem:[%s1935_s5] sm:$0xff] }
 0x1ab   :  { %v796_v29 = vpop.f32.mrf.mxu0 }
 0x1ac   :  { %v865_v11 = vpop.f32.mrf.mxu1 }
 0x1ae   :  { %v723_v59 = vpop.f32.mrf.mxu3 }
 0x1af   :  { %v622_v62 = vpop.f32.mrf.mxu2  ;;  %v724_v1 = vadd.f32 %v723_v59, %v615_v56 }
 0x1b0   :  { %v623_v47 = vadd.f32 %v622_v62, %v521_v37 }
 0x1b3   :  { %v801_v34 = vpop.f32.mrf.mxu0 }
 0x1b4   :  { %v871_v24 = vpop.f32.mrf.mxu1 }
 0x1b6   :  { %v727_v63 = vpop.f32.mrf.mxu3 }
 0x1b7   :  { %v630_v3 = vpop.f32.mrf.mxu2  ;;  %v728_v60 = vadd.f32 %v727_v63, %v623_v47 }
 0x1b8   :  { %v631_v5 = vadd.f32 %v630_v3, %v526_v45 }
 0x1b9   :  { %v797_v49 = vadd.f32 %v796_v29, %v728_v60 }
 0x1bb   :  { %v806_v41 = vpop.f32.mrf.mxu0  ;;  %v866_v62 = vadd.f32 %v865_v11, %v797_v49 }
 0x1bc   :  { %v877_v42 = vpop.f32.mrf.mxu1 }
 0x1be   :  { %v731_v6 = vpop.f32.mrf.mxu3 }
 0x1bf   :  { %v638_v9 = vpop.f32.mrf.mxu2  ;;  %v732_v0 = vadd.f32 %v731_v6, %v631_v5 }
 0x1c0   :  { %v639_v8 = vadd.f32 %v638_v9, %v531_v51 }
 0x1c1   :  { %v802_v48 = vadd.f32 %v801_v34, %v732_v0 }
 0x1c3   :  { %v811_v37 = vpop.f32.mrf.mxu0  ;;  %v872_v53 = vadd.f32 %v871_v24, %v802_v48  ;;  %v1031_v24 = vld [vmem:[%s1935_s5 + $0x8] sm:$0xff] }
 0x1c4   :  { %v883_v38 = vpop.f32.mrf.mxu1 }
 0x1c6   :  { %v735_v13 = vpop.f32.mrf.mxu3 }
 0x1c7   :  { %v646_v14 = vpop.f32.mrf.mxu2  ;;  %v736_v61 = vadd.f32 %v735_v13, %v639_v8 }
 0x1c8   :  { %v647_v15 = vadd.f32 %v646_v14, %v536_v10 }
 0x1c9   :  { %v807_v46 = vadd.f32 %v806_v41, %v736_v61 }
 0x1cb   :  { %v878_v23 = vadd.f32 %v877_v42, %v807_v46  ;;  %v816_v54 = vpop.f32.mrf.mxu0 }
 0x1cc   :  { %v889_v6 = vpop.f32.mrf.mxu1 }
 0x1ce   :  { %v739_v2 = vpop.f32.mrf.mxu3 }
 0x1cf   :  { %v654_v4 = vpop.f32.mrf.mxu2  ;;  %v740_v17 = vadd.f32 %v739_v2, %v647_v15 }
 0x1d0   :  { %v655_v33 = vadd.f32 %v654_v4, %v1795_v22 }
 0x1d1   :  { %v812_v25 = vadd.f32 %v811_v37, %v740_v17  ;;  %v1048_v37 = vsel %vm543_vm1, %v1031_v24, 0 }
 0x1d3   :  { %v884_v50 = vadd.f32 %v883_v38, %v812_v25 }
 0x1d6   :  { %v743_v19 = vpop.f32.mrf.mxu3 }
 0x1d7   :  { %v934_v12 = vpop.f32.mrf.mxu2  ;;  %v744_v51 = vadd.f32 %v743_v19, %v655_v33 }
 0x1d8   :  { %v935_v20 = vadd.f32 %v934_v12, %v848_v52  ;;  %v792_v52 = vadd.f32 %v791_v21, %v724_v1  ;;  %v854_v1 = vadd.f32 %v853_v18, %v787_v32  ;;  %v1045_v12 = vsel %vm543_vm1, %v1030_v57, 0 }
 0x1d9   :  { %v817_v47 = vadd.f32 %v816_v54, %v744_v51  ;;  %v1816_v34 = vand.u32 4294901760, %v1045_v12 }
 0x1da   :  { %v860_v5 = vadd.f32 %v859_v16, %v792_v52 }
 0x1db   :  { %v890_v13 = vadd.f32 %v889_v6, %v817_v47 }
 0x1de   :  { %v991_v26 = vpop.f32.mrf.mxu3 }
 0x1df   :  { %v938_v58 = vpop.f32.mrf.mxu2  ;;  %v1799_v28 = vadd.f32 %v991_v26, %v935_v20 }
 0x1e0   :  { %v939_v4 = vadd.f32 %v938_v58, %v854_v1 }
 0x1e6   :  { %v995_v30 = vpop.f32.mrf.mxu3 }
 0x1e7   :  { %v942_v31 = vpop.f32.mrf.mxu2  ;;  %v996_v20 = vadd.f32 %v995_v30, %v939_v4 }
 0x1e8   :  { %v943_v0 = vadd.f32 %v942_v31, %v860_v5 }
 0x1e9   :  { %v1023_v58 = vmax.f32 %v996_v20, 0.0 }
 0x1ee   :  { %v999_v35 = vpop.f32.mrf.mxu3 }
 0x1ef   :  { %v946_v36 = vpop.f32.mrf.mxu2  ;;  %v1000_v15 = vadd.f32 %v999_v35, %v943_v0 }
 0x1f0   :  { %v947_v60 = vadd.f32 %v946_v36, %v866_v62 }
 0x1f1   :  { %v1024_v26 = vmax.f32 %v1000_v15, 0.0 }
 0x1f6   :  { %v1003_v39 = vpop.f32.mrf.mxu3 }
 0x1f7   :  { %v950_v40 = vpop.f32.mrf.mxu2  ;;  %v1004_v14 = vadd.f32 %v1003_v39, %v947_v60  ;;  %v1022_v39 = vmax.f32 %v1799_v28, 0.0  ;;  %v1844_v28 = vand.u32 4294901760, %v1023_v58 }
 0x1f8   :  { %v951_v56 = vadd.f32 %v950_v40, %v872_v53  ;;  %v1829_v40 = vand.u32 4294901760, %v1024_v26 }
 0x1f9   :  { %v1025_v21 = vmax.f32 %v1004_v14, 0.0  ;;  %v1853_v25 = vand.u32 4294901760, %v1022_v39  ;;  %v1871_v51 = vsub.f32 %v1023_v58, %v1844_v28 }
 0x1fa   :  { %v1856_v48 = vsub.f32 %v1024_v26, %v1829_v40 }
 0x1fb   :  { %v1818_v35 = vand.u32 4294901760, %v1025_v21 }
 0x1fd   :  { %v1847_v38 = vsub.f32 %v1025_v21, %v1818_v35 }
 0x1fe   :  { %v1007_v43 = vpop.f32.mrf.mxu3 }
 0x1ff   :  { %v954_v10 = vpop.f32.mrf.mxu2  ;;  %v1008_v22 = vadd.f32 %v1007_v43, %v951_v56  ;;  %v1125_v54 = vand.u32 4294901760, %v1847_v38 }
 0x200   :  { %v955_v44 = vadd.f32 %v954_v10, %v878_v23  ;;  %v1841_v10 = vsub.f32 %v1045_v12, %v1816_v34 }
 0x201   :  { %v1026_v2 = vmax.f32 %v1008_v22, 0.0 }
 0x202   :  { %v1076_v23 = vand.u32 4294901760, %v1841_v10 }
 0x203   :  { %v1811_v29 = vand.u32 4294901760, %v1026_v2 }
 0x205   :  { %v1832_v41 = vsub.f32 %v1026_v2, %v1811_v29 }
 0x206   :  { %v1011_v45 = vpop.f32.mrf.mxu3 }
 0x207   :  { %v958_v27 = vpop.f32.mrf.mxu2  ;;  %v1012_v63 = vadd.f32 %v1011_v45, %v955_v44  ;;  %v1142_v44 = vsub.f32 %v1022_v39, %v1853_v25 }
 0x208   :  { %v959_v55 = vadd.f32 %v958_v27, %v884_v50  ;;  %v1119_v27 = vand.u32 4294901760, %v1832_v41  ;;  %v1867_v50 = vand.u32 4294901760, %v1048_v37 }
 0x209   :  { %v1027_v61 = vmax.f32 %v1012_v63, 0.0  ;;  %v1126_v63 = vsub.f32 %v1847_v38, %v1125_v54  ;;  %v1143_v5 = vand.u32 4294901760, %v1142_v44 }
 0x20a   :  { %v1120_v56 = vsub.f32 %v1832_v41, %v1119_v27  ;;  %v1083_v62 = vsub.f32 %v1048_v37, %v1867_v50 }
 0x20b   :  { %v1809_v16 = vand.u32 4294901760, %v1027_v61  ;;  %v1127_v0 = vand.u32 4294901760, %v1126_v63 }
 0x20c   :  { %v1121_v6 = vand.u32 4294901760, %v1120_v56 }
 0x20d   :  { %v1821_v36 = vsub.f32 %v1027_v61, %v1809_v16 }
 0x20e   :  { %v1015_v59 = vpop.f32.mrf.mxu3 }
 0x20f   :  { %v1016_v3 = vadd.f32 %v1015_v59, %v959_v55  ;;  %v962_v8 = vpop.f32.mrf.mxu2  ;;  %v1113_v46 = vand.u32 4294901760, %v1821_v36  ;;  %v1131_v55 = vand.u32 4294901760, %v1856_v48  ;;  %v1077_v59 = vsub.f32 %v1841_v10, %v1076_v23 }
 0x210   :  { %v963_v17 = vadd.f32 %v962_v8, %v890_v13  ;;  %v1144_v13 = vsub.f32 %v1142_v44, %v1143_v5 }
 0x211   :  { %v1028_v9 = vmax.f32 %v1016_v3, 0.0  ;;  %v1114_v53 = vsub.f32 %v1821_v36, %v1113_v46  ;;  %v1137_v3 = vand.u32 4294901760, %v1871_v51  ;;  %v1078_v22 = vand.u32 4294901760, %v1077_v59 }
 0x212   :  { %v1132_v60 = vsub.f32 %v1856_v48, %v1131_v55  ;;  %v1145_v57 = vand.u32 4294901760, %v1144_v13 }
 0x213   :  { %v1806_v7 = vand.u32 4294901760, %v1028_v9  ;;  %v1115_v47 = vand.u32 4294901760, %v1114_v53  ;;  %v1138_v8 = vsub.f32 %v1871_v51, %v1137_v3 }
 0x214   :  { %v1133_v1 = vand.u32 4294901760, %v1132_v60 }
 0x215   :  { %v1814_v31 = vsub.f32 %v1028_v9, %v1806_v7  ;;  %v1084_v9 = vand.u32 4294901760, %v1083_v62  ;;  %v1139_v61 = vand.u32 4294901760, %v1138_v8 }
 0x216   :  { %v1019_v19 = vpop.f32.mrf.mxu3 }
 0x217   :  { %v1020_v18 = vadd.f32 %v1019_v19, %v963_v17  ;;  %v1107_v43 = vand.u32 4294901760, %v1814_v31  ;;  %v1085_v14 = vsub.f32 %v1083_v62, %v1084_v9  ;;  %v1037_v19 = vpop.permute.xlu1 %1036 }
 0x219   :  { %v1029_v11 = vmax.f32 %v1020_v18, 0.0  ;;  %v1108_v49 = vsub.f32 %v1814_v31, %v1107_v43  ;;  %v1086_v15 = vand.u32 4294901760, %v1085_v14  ;;  %v1042_v18 = vpop.permute.xlu2 %1041 }
 0x21b   :  { %v1823_v30 = vand.u32 4294901760, %v1029_v11  ;;  %v1109_v32 = vand.u32 4294901760, %v1108_v49 }
 0x21d   :  { %v1835_v42 = vsub.f32 %v1029_v11, %v1823_v30  ;;  %1059 = vmatpush.msrb.mxu0 %v1823_v30  ;;  %1208 = vmatpush.msra.mxu3 %v1823_v30 }
 0x21f   :  { %v1101_v45 = vand.u32 4294901760, %v1835_v42  ;;  %1061 = vmatpush.msrb.mxu0 %v1806_v7  ;;  %1166 = vmatpush.msra.mxu2 %v1835_v42 }
 0x220   :  { %1210 = vmatpush.msra.mxu3 %v1806_v7 }
 0x221   :  { %v1102_v33 = vsub.f32 %v1835_v42, %v1101_v45  ;;  %1063 = vmatpush.msrb.mxu0 %v1809_v16  ;;  %1169 = vmatpush.msra.mxu2 %v1814_v31 }
 0x222   :  { %1212 = vmatpush.msra.mxu3 %v1809_v16 }
 0x223   :  { %1065 = vmatpush.msrb.mxu0 %v1811_v29  ;;  %1172 = vmatpush.msra.mxu2 %v1821_v36  ;;  %v1103_v52 = vand.u32 4294901760, %v1102_v33 }
 0x224   :  { %1214 = vmatpush.msra.mxu3 %v1811_v29 }
 0x225   :  { %1067 = vmatpush.msrb.mxu0 %v1818_v35  ;;  %1104 = vmatpush.msrb.mxu1 %v1103_v52 }
 0x226   :  { %1175 = vmatpush.msra.mxu2 %v1832_v41  ;;  %1216 = vmatpush.msra.mxu3 %v1818_v35 }
 0x227   :  { %1069 = vmatpush.msrb.mxu0 %v1829_v40  ;;  %1110 = vmatpush.msrb.mxu1 %v1109_v32 }
 0x228   :  { %1178 = vmatpush.msra.mxu2 %v1847_v38  ;;  %1218 = vmatpush.msra.mxu3 %v1829_v40  ;;  %v1325_v38 = vpop.permute.xlu0 %1324 }
 0x229   :  { %1071 = vmatpush.msrb.mxu0 %v1844_v28  ;;  %1116 = vmatpush.msrb.mxu1 %v1115_v47 }
 0x22a   :  { %1181 = vmatpush.msra.mxu2 %v1856_v48  ;;  %1220 = vmatpush.msra.mxu3 %v1844_v28 }
 0x22b   :  { %1073 = vmatpush.msrb.mxu0 %v1853_v25  ;;  %1122 = vmatpush.msrb.mxu1 %v1121_v6 }
 0x22c   :  { %1184 = vmatpush.msra.mxu2 %v1871_v51  ;;  %1222 = vmatpush.msra.mxu3 %v1853_v25  ;;  %v1342_v51 = vstv %s1938_s8 }
 0x22d   :  { %1079 = vmatmul.f32.vlgmr.msrb.gmra.mxu0 %v1078_v22  ;;  %1128 = vmatpush.msrb.mxu1 %v1127_v0 }
 0x22e   :  { %1247 = vmatpush.msra.mxu0 %v1101_v45  ;;  %1187 = vmatpush.msra.mxu2 %v1142_v44  ;;  %v1330_v45 = vpop.permute.xlu1 %1329 }
 0x22f   :  { %1134 = vmatpush.msrb.mxu1 %v1133_v1  ;;  %1190 = vmatmul.f32.vlgmr.msra.gmra.mxu2 %v1841_v10 }
 0x230   :  { %1251 = vmatpush.msra.mxu0 %v1107_v43  ;;  %1226 = vmatmul.f32.vlgmr.msra.gmra.mxu3 %v1076_v23 }
 0x231   :  { %1140 = vmatpush.msrb.mxu1 %v1139_v61 }
 0x232   :  { %1255 = vmatpush.msra.mxu0 %v1113_v46 }
 0x233   :  { %1146 = vmatpush.msrb.mxu1 %v1145_v57 }
 0x234   :  { %1259 = vmatpush.msra.mxu0 %v1119_v27  ;;  %1148 = vmatmul.f32.vlgmr.msrb.gmra.mxu1 %v1816_v34 }
 0x235   :  { %1087 = vmatmul.f32.gmra.mxu0 %v1086_v15  ;;  %1294 = vmatpush.msra.mxu1 %v1823_v30 }
 0x236   :  { %1263 = vmatpush.msra.mxu0 %v1125_v54 }
 0x237   :  { %1296 = vmatpush.msra.mxu1 %v1806_v7  ;;  %1195 = vmatmul.f32.gmra.mxu2 %v1083_v62 }
 0x238   :  { %1267 = vmatpush.msra.mxu0 %v1131_v55  ;;  %1232 = vmatmul.f32.gmra.mxu3 %v1084_v9 }
 0x239   :  { %1298 = vmatpush.msra.mxu1 %v1809_v16 }
 0x23a   :  { %1271 = vmatpush.msra.mxu0 %v1137_v3 }
 0x23b   :  { %1300 = vmatpush.msra.mxu1 %v1811_v29 }
 0x23c   :  { %1275 = vmatpush.msra.mxu0 %v1143_v5  ;;  %1152 = vmatmul.f32.gmra.mxu1 %v1867_v50 }
 0x23d   :  { %1277 = vmatmul.f32.vlgmr.msra.gmra.mxu0 %v1816_v34  ;;  %1302 = vmatpush.msra.mxu1 %v1818_v35 }
 0x23f   :  { %1304 = vmatpush.msra.mxu1 %v1829_v40 }
 0x241   :  { %1306 = vmatpush.msra.mxu1 %v1844_v28 }
 0x243   :  { %1308 = vmatpush.msra.mxu1 %v1853_v25 }
 0x244   :  { %1310 = vmatmul.f32.vlgmr.msra.gmra.mxu1 %v1816_v34 }
 0x245   :  { %1281 = vmatmul.f32.gmra.mxu0 %v1867_v50 }
 0x24c   :  { %1314 = vmatmul.f32.gmra.mxu1 %v1867_v50 }
 0x2aa   :  { %v1080_v2 = vpop.f32.mrf.mxu0 }
 0x2ab   :  { %v1081_v12 = vadd.f32 %v1080_v2, %v1037_v19 }
 0x2b1   :  { %v1149_v4 = vpop.f32.mrf.mxu1 }
 0x2b2   :  { %v1088_v17 = vpop.f32.mrf.mxu0  ;;  %v1191_v7 = vpop.f32.mrf.mxu2  ;;  %v1150_v16 = vadd.f32 %v1149_v4, %v1081_v12 }
 0x2b3   :  { %v1227_v20 = vpop.f32.mrf.mxu3  ;;  %v1089_v29 = vadd.f32 %v1088_v17, %v1042_v18 }
 0x2b4   :  { %v1192_v31 = vadd.f32 %v1191_v7, %v1150_v16 }
 0x2b6   :  { %v1228_v35 = vadd.f32 %v1227_v20, %v1192_v31 }
 0x2b9   :  { %v1153_v21 = vpop.f32.mrf.mxu1 }
 0x2ba   :  { %v1278_v26 = vpop.f32.mrf.mxu0  ;;  %v1154_v11 = vadd.f32 %v1153_v21, %v1089_v29  ;;  %v1196_v58 = vpop.f32.mrf.mxu2 }
 0x2bb   :  { %v1233_v30 = vpop.f32.mrf.mxu3  ;;  %v1279_v24 = vadd.f32 %v1278_v26, %v1228_v35 }
 0x2bc   :  { %v1197_v36 = vadd.f32 %v1196_v58, %v1154_v11 }
 0x2be   :  { %v1234_v40 = vadd.f32 %v1233_v30, %v1197_v36 }
 0x2c1   :  { %v1311_v34 = vpop.f32.mrf.mxu1 }
 0x2c2   :  { %v1282_v39 = vpop.f32.mrf.mxu0  ;;  %v1312_v41 = vadd.f32 %v1311_v34, %v1279_v24 }
 0x2c3   :  { %v1283_v42 = vadd.f32 %v1282_v39, %v1234_v40 }
 0x2c4   :  { %v1318_v10 = vmax.f32 %v1312_v41, 0.0 }
 0x2c6   :  { %v1332_v46 = vmul.f32 %v1325_v38, %v1318_v10 }
 0x2c9   :  { %v1315_v43 = vpop.f32.mrf.mxu1 }
 0x2ca   :  { %v1316_v37 = vadd.f32 %v1315_v43, %v1283_v42 }
 0x2cc   :  { %v1319_v28 = vmax.f32 %v1316_v37, 0.0 }
 0x2ce   :  { %v1333_v25 = vmul.f32 %v1330_v45, %v1319_v28 }
 0x2d0   :  { %v1334_v48 = vadd.f32 %v1333_v25, %v1332_v46 }
 0x2d2   :  { %v1335_v27 = vrot.slane %v1334_v48, 4 }
 0x2d4   :  { %v1336_v33 = vadd.f32 %v1335_v27, %v1334_v48 }
 0x2d6   :  { %v1337_v49 = vrot.slane %v1336_v33, 2 }
 0x2d8   :  { %v1338_v23 = vadd.f32 %v1337_v49, %v1336_v33 }
 0x2da   :  { %v1339_v50 = vrot.slane %v1338_v23, 1 }
 0x2dc   :  { %v1340_v52 = vadd.f32 %v1339_v50, %v1338_v23 }
 0x2de   :  { %v1343_v53 = vadd.f32 %v1342_v51, %v1340_v52 }
 0x2e0   :  { %1344 = vst [vmem:[#allocation3] sm:$0x1] %v1343_v53 }
 0x2e1   :  { %1355 = dma.vmem_to_hbm [thread:$0]  %s1351_s15, 16, %s1353_s17, [#allocation4]  }
 0x2e2   :  { %1392 = dma.done.wait [#allocation4], 16  }
 0x2e3   :  { %1393 = vsyncadd [#allocation4], 4294967280 }
 0x2e4   :  { %1360 = vsyncpa [#allocation4], 1 }

</bundles_post_ra>
